<compile_context>
chip_gen: v7x
topology: tpu7x:2x2x1
jax: 0.10.0
libtpu: 0.0.40
codegen_flags: <defaults>
</compile_context>

<pallas_src>
import jax
import jax.numpy as jnp
from jax import lax
from jax.experimental import pallas as pl
from jax.experimental.pallas import tpu as pltpu


def _ce_partial_kernel(n_ref, logits_ref, labels_ref, out_ref):
    """Per-tile partial cross-entropy sum.

    n_ref      : (1,) int32 scalar-prefetch (SMEM) -- number of valid rows in this tensor.
    logits_ref : (tile_n, C) block, any float dtype (cast to f32 in-kernel).
    labels_ref : (tile_n, 1) int32 block.
    out_ref    : (8, 128) f32 block; this tile's partial sum is stored at [0, 0].
    """
    i = pl.program_id(0)
    tile_n, c = logits_ref.shape
    n_valid = n_ref[0]

    x = logits_ref[...].astype(jnp.float32)            # (tile_n, C)
    labels = labels_ref[...]                            # (tile_n, 1) int32

    # Mask rows past the end of the array (ragged last tile). Padded block contents are
    # undefined, so zero the logits BEFORE max/exp to keep the LSE finite.
    row_ids = i * tile_n + lax.broadcasted_iota(jnp.int32, (tile_n, 1), 0)
    row_valid = row_ids < n_valid                        # (tile_n, 1) bool
    x = jnp.where(row_valid, x, 0.0)

    # numerically-stable log-sum-exp over the class (lane) axis
    m = jnp.max(x, axis=-1, keepdims=True)               # (tile_n, 1)
    lse = m + jnp.log(jnp.sum(jnp.exp(x - m), axis=-1, keepdims=True))

    # logit at the target class via one-hot select (garbage labels in masked rows are harmless)
    class_iota = lax.broadcasted_iota(jnp.int32, (tile_n, c), 1)
    sel = jnp.sum(jnp.where(class_iota == labels, x, 0.0),
                  axis=-1, keepdims=True)                 # (tile_n, 1)

    per_row = jnp.where(row_valid, lse - sel, 0.0)        # (tile_n, 1)
    partial = jnp.sum(per_row)                            # scalar (per-tile partial)

    sub = lax.broadcasted_iota(jnp.int32, out_ref.shape, 0)
    lane = lax.broadcasted_iota(jnp.int32, out_ref.shape, 1)
    out_ref[...] = jnp.where((sub == 0) & (lane == 0), partial, 0.0)


def _pick_tile_n(n, c):
    """Rows per block: ~2 MiB of lane-padded f32, a multiple of 32 (covers bf16/int8 sublane
    packing), capped at the 8-row-padded batch size. Sized so double-buffered inputs plus the
    in-kernel f32 temporaries stay well under the 32 MiB scoped-VMEM budget (v7x-safe)."""
    target_bytes = 2 * 1024 * 1024
    lane_padded = ((c + 127) // 128) * 128
    t = target_bytes // (lane_padded * 4)
    if t >= 32:
        t = (t // 32) * 32
    else:
        t = max(8, (t // 8) * 8)                           # very wide C: shrink to 8-row blocks
    n_up8 = ((n + 7) // 8) * 8
    return int(min(t, n_up8))


def _ce_sum(logits, labels, tile_n=None):
    """Un-normalised sum of per-row cross-entropy losses for one logits tensor."""
    n, c = logits.shape
    if tile_n is None:
        tile_n = _pick_tile_n(n, c)
    num_tiles = pl.cdiv(n, tile_n)
    labels2d = labels.astype(jnp.int32).reshape(n, 1)
    n_arr = jnp.array([n], dtype=jnp.int32)                # scalar prefetch: valid-row count

    slab = pl.pallas_call(
        _ce_partial_kernel,
        out_shape=jax.ShapeDtypeStruct((num_tiles * 8, 128), jnp.float32),
        grid_spec=pltpu.PrefetchScalarGridSpec(
            num_scalar_prefetch=1,
            grid=(num_tiles,),
            in_specs=[
                pl.BlockSpec((tile_n, c), lambda i, n_ref: (i, 0)),
                pl.BlockSpec((tile_n, 1), lambda i, n_ref: (i, 0)),
            ],
            out_specs=pl.BlockSpec((8, 128), lambda i, n_ref: (i, 0)),
        ),
        compiler_params=pltpu.CompilerParams(
            dimension_semantics=("parallel",),
            vmem_limit_bytes=32 * 1024 * 1024,
        ),
    )(n_arr, logits, labels2d)
    return jnp.sum(slab)


def ce_loss_pallas(outputs_p_w, outputs_u_w, targets_p, targets_u=None,
                   targets_u_true=None, *, tile_n=None):
    """Equivalent of CELoss.forward: mean CE over cat(logits), cat(labels), computed
    without materialising the concatenation (one kernel launch per logits tensor)."""
    del targets_u  # unused by the reference module as well
    s_p = _ce_sum(outputs_p_w, targets_p, tile_n)
    s_u = _ce_sum(outputs_u_w, targets_u_true, tile_n)
    n_total = outputs_p_w.shape[0] + outputs_u_w.shape[0]
    return (s_p + s_u) / jnp.float32(n_total)


def _reference(outputs_p_w, outputs_u_w, targets_p, targets_u_true):
    logits = jnp.concatenate([outputs_p_w, outputs_u_w], axis=0)
    labels = jnp.concatenate([targets_p, targets_u_true], axis=0)
    logp = jax.nn.log_softmax(logits.astype(jnp.float32), axis=-1)
    return -jnp.mean(jnp.take_along_axis(logp, labels[:, None], axis=-1))


if __name__ == "__main__":
    key = jax.random.PRNGKey(0)
    k1, k2, k3, k4 = jax.random.split(key, 4)

    NP, NU, C = 8, 8, 32  # labeled batch, unlabeled batch, num classes
    outputs_p_w = jax.random.normal(k1, (NP, C), dtype=jnp.float32)
    outputs_u_w = jax.random.normal(k2, (NU, C), dtype=jnp.float32)
    targets_p = jax.random.randint(k3, (NP,), 0, C, dtype=jnp.int32)
    targets_u_true = jax.random.randint(k4, (NU,), 0, C, dtype=jnp.int32)

    loss = jax.block_until_ready(
        ce_loss_pallas(outputs_p_w, outputs_u_w, targets_p,
                       targets_u_true=targets_u_true))
    ref = _reference(outputs_p_w, outputs_u_w, targets_p, targets_u_true)
    assert jnp.allclose(loss, ref, atol=1e-5, rtol=1e-5), (loss, ref)

    # ragged / multi-tile / bf16 path (several tiles + a partial last tile, masked in-kernel)
    k5, k6, k7, k8 = jax.random.split(k1, 4)
    NP2, NU2, C2 = 50, 37, 100
    op = jax.random.normal(k5, (NP2, C2), dtype=jnp.bfloat16)
    ou = jax.random.normal(k6, (NU2, C2), dtype=jnp.bfloat16)
    tp = jax.random.randint(k7, (NP2,), 0, C2, dtype=jnp.int32)
    tu = jax.random.randint(k8, (NU2,), 0, C2, dtype=jnp.int32)
    loss2 = jax.block_until_ready(
        ce_loss_pallas(op, ou, tp, targets_u_true=tu, tile_n=16))
    ref2 = _reference(op, ou, tp, tu)
    assert jnp.allclose(loss2, ref2, atol=2e-2, rtol=2e-2), (loss2, ref2)

    print("KERNEL_OK")
</pallas_src>

<mosaic_0001>
module attributes {stable_mosaic.version = 11 : i64} {
  func.func @_ce_partial_kernel(%arg0: i32, %arg1: memref<1xi32, #tpu.memory_space<smem>>, %arg2: memref<8x32xf32, #tpu.memory_space<vmem>>, %arg3: memref<8x1xi32, #tpu.memory_space<vmem>>, %arg4: memref<8x128xf32, #tpu.memory_space<vmem>>) attributes {dimension_semantics = [#tpu.dimension_semantics<parallel>], iteration_bounds = array<i64: 1>, scalar_prefetch = 1 : i64, scratch_operands = 0 : i64, tpu.core_type = #tpu.core_type<tc>, window_params = [{transform_indices = @transform_0, window_bounds = array<i64: 8, 32>}, {transform_indices = @transform_1, window_bounds = array<i64: 8, 1>}, {transform_indices = @transform_2, window_bounds = array<i64: 8, 128>}]} {
    %c0 = arith.constant 0 : index
    %0 = memref.load %arg1[%c0] : memref<1xi32, #tpu.memory_space<smem>>
    %c0_0 = arith.constant 0 : index
    %c0_1 = arith.constant 0 : index
    %1 = vector.load %arg2[%c0_0, %c0_1] : memref<8x32xf32, #tpu.memory_space<vmem>>, vector<8x32xf32>
    %c0_2 = arith.constant 0 : index
    %c0_3 = arith.constant 0 : index
    %2 = vector.load %arg3[%c0_2, %c0_3] : memref<8x1xi32, #tpu.memory_space<vmem>>, vector<8x1xi32>
    %c8_i32 = arith.constant 8 : i32
    %3 = arith.muli %arg0, %c8_i32 : i32
    %4 = tpu.iota {dimensions = array<i32: 0>} : vector<8x1xi32>
    %5 = vector.broadcast %3 : i32 to vector<8x1xi32>
    %6 = arith.addi %5, %4 : vector<8x1xi32>
    %7 = vector.broadcast %0 : i32 to vector<8x1xi32>
    %8 = arith.cmpi slt, %6, %7 : vector<8x1xi32>
    %cst = arith.constant 0.000000e+00 : f32
    %9 = vector.shape_cast %8 : vector<8x1xi1> to vector<8x1xi1>
    %10 = vector.broadcast %9 : vector<8x1xi1> to vector<8x32xi1>
    %11 = vector.broadcast %cst : f32 to vector<8x32xf32>
    %12 = arith.select %10, %1, %11 : vector<8x32xi1>, vector<8x32xf32>
    %cst_4 = arith.constant dense<0xFF800000> : vector<8xf32>
    %13 = vector.multi_reduction <maximumf>, %12, %cst_4 [1] : vector<8x32xf32> to vector<8xf32>
    %14 = vector.shape_cast %13 : vector<8xf32> to vector<8x1xf32>
    %15 = vector.broadcast %14 : vector<8x1xf32> to vector<8x32xf32>
    %16 = arith.subf %12, %15 : vector<8x32xf32>
    %17 = math.exp %16 : vector<8x32xf32>
    %cst_5 = arith.constant dense<0.000000e+00> : vector<8xf32>
    %18 = vector.multi_reduction <add>, %17, %cst_5 [1] : vector<8x32xf32> to vector<8xf32>
    %19 = vector.shape_cast %18 : vector<8xf32> to vector<8x1xf32>
    %20 = math.log %19 : vector<8x1xf32>
    %21 = arith.addf %14, %20 : vector<8x1xf32>
    %22 = tpu.iota {dimensions = array<i32: 1>} : vector<8x32xi32>
    %23 = vector.broadcast %2 : vector<8x1xi32> to vector<8x32xi32>
    %24 = arith.cmpi eq, %22, %23 : vector<8x32xi32>
    %cst_6 = arith.constant 0.000000e+00 : f32
    %25 = vector.broadcast %cst_6 : f32 to vector<8x32xf32>
    %26 = arith.select %24, %12, %25 : vector<8x32xi1>, vector<8x32xf32>
    %cst_7 = arith.constant dense<0.000000e+00> : vector<8xf32>
    %27 = vector.multi_reduction <add>, %26, %cst_7 [1] : vector<8x32xf32> to vector<8xf32>
    %28 = vector.shape_cast %27 : vector<8xf32> to vector<8x1xf32>
    %29 = arith.subf %21, %28 : vector<8x1xf32>
    %cst_8 = arith.constant 0.000000e+00 : f32
    %30 = vector.broadcast %cst_8 : f32 to vector<8x1xf32>
    %31 = arith.select %8, %29, %30 : vector<8x1xi1>, vector<8x1xf32>
    %32 = vector.shape_cast %31 : vector<8x1xf32> to vector<1x8x1xf32>
    %cst_9 = arith.constant dense<0.000000e+00> : vector<1xf32>
    %33 = vector.multi_reduction <add>, %32, %cst_9 [1, 2] : vector<1x8x1xf32> to vector<1xf32>
    %34 = vector.shape_cast %33 : vector<1xf32> to vector<1x1x1xf32>
    %35 = vector.extract %34[0, 0, 0] : f32 from vector<1x1x1xf32>
    %36 = tpu.iota {dimensions = array<i32: 0>} : vector<8x128xi32>
    %37 = tpu.iota {dimensions = array<i32: 1>} : vector<8x128xi32>
    %c0_i32 = arith.constant 0 : i32
    %38 = vector.broadcast %c0_i32 : i32 to vector<8x128xi32>
    %39 = arith.cmpi eq, %36, %38 : vector<8x128xi32>
    %c0_i32_10 = arith.constant 0 : i32
    %40 = vector.broadcast %c0_i32_10 : i32 to vector<8x128xi32>
    %41 = arith.cmpi eq, %37, %40 : vector<8x128xi32>
    %42 = arith.andi %39, %41 : vector<8x128xi1>
    %cst_11 = arith.constant 0.000000e+00 : f32
    %43 = vector.broadcast %35 : f32 to vector<8x128xf32>
    %44 = vector.broadcast %cst_11 : f32 to vector<8x128xf32>
    %45 = arith.select %42, %43, %44 : vector<8x128xi1>, vector<8x128xf32>
    %c0_12 = arith.constant 0 : index
    %c0_13 = arith.constant 0 : index
    %46 = vector.load %arg4[%c0_12, %c0_13] : memref<8x128xf32, #tpu.memory_space<vmem>>, vector<8x128xf32>
    tpu.vector_store %arg4[%c0_12, %c0_13], %45 {strides = array<i32>} : memref<8x128xf32, #tpu.memory_space<vmem>>, vector<8x128xf32>,
    return
  }
  func.func @transform_0(%arg0: i32, %arg1: memref<1xi32, #tpu.memory_space<smem>>) -> (i32, i32) {
    %c0_i32 = arith.constant 0 : i32
    %c0_i32_0 = arith.constant 0 : i32
    return %arg0, %c0_i32 : i32, i32
  }
  func.func @transform_1(%arg0: i32, %arg1: memref<1xi32, #tpu.memory_space<smem>>) -> (i32, i32) {
    %c0_i32 = arith.constant 0 : i32
    %c0_i32_0 = arith.constant 0 : i32
    return %arg0, %c0_i32 : i32, i32
  }
  func.func @transform_2(%arg0: i32, %arg1: memref<1xi32, #tpu.memory_space<smem>>) -> (i32, i32) {
    %c0_i32 = arith.constant 0 : i32
    %c0_i32_0 = arith.constant 0 : i32
    return %arg0, %c0_i32 : i32, i32
  }
}

</mosaic_0001>

<bundles_post_ra>
// kernel: tpu_custom_call.1
= control target key start
LH: loop header
LB: loop body
LE: loop exit
PB: predicated region body
PF: predicated region fallthrough
CT: control target
= control target key end

     0   :  { %v18_v0 = vlaneseq  ;;  %s170_s0 = inlined_call_operand.<no memory space> [shape: s32[1], index: 0, kind: input, shape index: {}]   ;;  %s171_s1 = inlined_call_operand.vmem [shape: f32[8,32], index: 1, kind: input, shape index: {}]   ;;  %s172_s2 = inlined_call_operand.vmem [shape: s32[8,1], index: 2, kind: input, shape index: {}]   ;;  %s173_s3 = inlined_call_operand.hbm [shape: f32[8,128], index: 3, kind: output, shape index: {}]  }
   0x1   :  { %9 = vsyncpa [#allocation5], 0  ;;  %v22_v1 = vstv %s170_s0  ;;  %v116_v2 = vmov 0   ;;  %v15_v3 = vld [vmem:[%s171_s1] sm:$0xff]  ;;  %vm27_vm0 = vcmask 261120   ;;  %vm52_vm3 = vcmask 7168  }
   0x2   :  { %87 = vset.pattern.permute.xlu0 %v116_v2  ;;  %v19_v4 = vshrl.u32 %v18_v0, 7  ;;  %v16_v8 = vld [vmem:[%s172_s2] sm:$0xff]  ;;  %v41_v12 = vand.u32 127, %v18_v0  ;;  %s117_s1 = smov [#allocation4]  }
   0x3   :  { %s75_s2 = sshll.u32 %s117_s1, 4  ;;  %s76_s2 = int_to_ptr.vmem [resolvable:$true] %s75_s2 }
   0x4   :  { %vm144_vm1 = vcmp.lt.s32.totalorder %v19_v4, %v22_v1  ;;  %vm63_vm4 = vcmp.eq.s32.totalorder %v19_v4, 0  ;;  %vm64_vm5 = vcmp.eq.s32.totalorder %v41_v12, 0  ;;  %s92_s18 = scalar_lea.vmem %s76_s2, 128  ;;  %p97_p1 = scmp.lt.s32.totalorder %s76_s2, %s76_s2 }
   0x5   :  { %v26_v6 = vsel %vm144_vm1, %v15_v3, 0.0  ;;  %vm65_vm6 = vmand %vm63_vm4, %vm64_vm5  ;;  %p93_p0 = scmp.ne.s32.totalorder %s76_s2, %s92_s18  ;;  %p98_p2 = scmp.lt.s32.totalorder %s92_s18, %s92_s18 }
   0x6   :  { %v28_v7 = vsel %vm27_vm0, %v26_v6, -inf }
   0x7   :  { %29 = vmax.xlane.f32.xlu0 %v28_v7  ;;  %p99_p3 = por %p98_p2, %p97_p1 }
   0x9   :  { %p100_p4 = pnand %p99_p3, %p93_p0 }
  0x1d   :  { %43 = vperm.xlu0 %87, %v16_v8  }
  0x94   :  { %v30_v9 = vpop.xlane.xlu0 %29 }
  0x95   :  { %v31_v10 = vsub.f32 %v26_v6, %v30_v9 }
  0x97   :  { %v32_v11 = vmul.f32 1.442695, %v31_v10 }
  0x99   :  { %88 = vpow2.f32 %v32_v11 }
  0x9c   :  { %v44_v13 = vpop.permute.xlu0 %43 }
  0x9d   :  { %vm45_vm2 = vcmp.eq.s32.totalorder %v41_v12, %v44_v13 }
  0x9e   :  { %v46_v15 = vsel %vm45_vm2, %v26_v6, 0.0 }
  0x9f   :  { %v47_v17 = vsel %vm27_vm0, %v46_v15, 0.0 }
  0xa3   :  { %v89_v14 = vpop.eup %88 }
  0xa4   :  { %v34_v16 = vsel %vm27_vm0, %v89_v14, 0.0 }
  0xa5   :  { %35 = vadd.xlane.f32.xlu1 %v34_v16 }
  0xa9   :  { %48 = vadd.xlane.f32.xlu1 %v47_v17 }
 0x132   :  { %v36_v18 = vpop.xlane.xlu1 %35 }
 0x133   :  { %90 = vlog2.f32 %v36_v18 }
 0x136   :  { %v49_v21 = vpop.xlane.xlu1 %48 }
 0x13d   :  { %v91_v19 = vpop.eup %90 }
 0x13e   :  { %v38_v20 = vmul.f32 0.6931472, %v91_v19 }
 0x140   :  { %v39_v22 = vadd.f32 %v38_v20, %v30_v9 }
 0x142   :  { %v50_v23 = vsub.f32 %v39_v22, %v49_v21 }
 0x144   :  { %v51_v24 = vsel %vm144_vm1, %v50_v23, 0.0 }
 0x145   :  { %v53_v25 = vsel %vm52_vm3, %v51_v24, 0.0 }
 0x146   :  { %54 = vadd.xlane.f32.xlu1 %v53_v25 }
 0x1d3   :  { %v55_v26 = vpop.xlane.xlu1 %54 }
 0x1d4   :  { %v56_v27 = vrot.slane %v55_v26, 4 }
 0x1d6   :  { %v57_v28 = vadd.f32 %v56_v27, %v55_v26 }
 0x1d8   :  { %v58_v29 = vrot.slane %v57_v28, 2 }
 0x1da   :  { %v59_v30 = vadd.f32 %v58_v29, %v57_v28 }
 0x1dc   :  { %v60_v31 = vrot.slane %v59_v30, 1 }
 0x1de   :  { %v61_v32 = vadd.f32 %v60_v31, %v59_v30 }
 0x1e0   :  { %83 = vpush %v61_v32 }
 0x211   :  { %s84_s17 = spop %83 }
 0x212   :  { %v66_v33 = vstv %s84_s17 }
 0x213   :  { %v67_v34 = vsel %vm65_vm6, %v66_v33, 0.0 }
 0x214   :  { %68 = vst [vmem:[#allocation4] sm:$0xff] %v67_v34 }
 0x215   :  { %103 = shalt.err (!%p100_p4)
}
 0x216   :  { %s104_s21 = scalar_lea.hbm %s173_s3, 128 }
 0x217   :  { %p105_p5 = scmp.ne.s32.totalorder %s173_s3, %s104_s21  ;;  %p108_p6 = scmp.lt.u32.totalorder %s104_s21, %s173_s3 }
 0x219   :  { %p110_p7 = pnand %p108_p6, %p105_p5 }
 0x21b   :  { %113 = shalt.err (!%p110_p7)
}
 0x21c   :  { %78 = dma.vmem_to_hbm [thread:$0]  %s76_s2, 128, %s173_s3, [#allocation5]  }
 0x21d   :  { %114 = dma.done.wait [#allocation5], 128  }
 0x21e   :  { %115 = vsyncadd [#allocation5], 4294967168 }
 0x21f   :  { %82 = vsyncpa [#allocation5], 1 }

</bundles_post_ra>
